<compile_context>
chip_gen: v7x
topology: tpu7x:2x2x1
jax: 0.10.0
libtpu: 0.0.40
codegen_flags: <defaults>
</compile_context>

<pallas_src>
import jax
import jax.numpy as jnp
from jax import lax
from jax.experimental import pallas as pl
from jax.experimental.pallas import tpu as pltpu


def _round_up(n, m):
    return ((n + m - 1) // m) * m


def _teacher_kernel(x_ref, w1_ref, b1_ref, w2_ref, b2_ref, w3_ref, b3_ref,
                    w4_ref, b4_ref, o_ref):
    # x tile: [TB, 100]; weights (bf16) and biases (f32) are VMEM-resident blocks.
    # MXU inputs are bf16 (single-pass matmuls), accumulation + bias/ReLU in f32.
    xb = x_ref[...].astype(jnp.bfloat16)
    h = jnp.dot(xb, w1_ref[...], preferred_element_type=jnp.float32)
    h = jnp.maximum(h + b1_ref[...], 0.0)                              # [TB, 75] f32
    h = jnp.dot(h.astype(jnp.bfloat16), w2_ref[...],
                preferred_element_type=jnp.float32)
    h = jnp.maximum(h + b2_ref[...], 0.0)                              # [TB, 50] f32
    h = jnp.dot(h.astype(jnp.bfloat16), w3_ref[...],
                preferred_element_type=jnp.float32)
    h = jnp.maximum(h + b3_ref[...], 0.0)                              # [TB, 25] f32
    # Final layer (out_features == 1): contract the minor axes of w4 [1,25] and
    # h [TB,25] (the standard q.k^T-style MXU pattern) so the result is a
    # lane-dense [1, TB] row -> no N=1 matmul and no masked partial stores.
    y = lax.dot_general(w4_ref[...], h.astype(jnp.bfloat16),
                        dimension_numbers=(((1,), (1,)), ((), ())),
                        preferred_element_type=jnp.float32)            # [1, TB]
    o_ref[...] = (y + b4_ref[...]).astype(o_ref.dtype)


def teacher_forward(x, params, *, tb=8192):
    """x: [B, 100] float (f32 or bf16) -> [B, 1] f32."""
    w1, b1, w2, b2, w3, b3, w4, b4 = params
    B = x.shape[0]

    tb = max(128, _round_up(tb, 128))
    if B <= min(tb, 1024):
        # Single tile: block shape == full array dims, no (8,128) alignment needed.
        TB = B
    else:
        # >= 2 tiles so the "parallel" batch axis can shard across both v7x
        # TensorCores; multiple of 128 keeps the (1, TB) output block lane-aligned
        # and the (TB, 100) x block sublane-aligned.  No host-side padding: Pallas
        # masks the ragged last block.
        TB = min(tb, _round_up(pl.cdiv(B, 2), 128))
    grid = (pl.cdiv(B, TB),)

    out = pl.pallas_call(
        _teacher_kernel,
        out_shape=jax.ShapeDtypeStruct((1, B), jnp.float32),
        grid=grid,
        in_specs=[
            pl.BlockSpec((TB, 100), lambda i: (i, 0)),   # x tile (pipelined over batch)
            pl.BlockSpec((100, 75), lambda i: (0, 0)),   # w1 (resident, [in,out] bf16)
            pl.BlockSpec((1, 75),   lambda i: (0, 0)),   # b1 (f32)
            pl.BlockSpec((75, 50),  lambda i: (0, 0)),   # w2
            pl.BlockSpec((1, 50),   lambda i: (0, 0)),   # b2
            pl.BlockSpec((50, 25),  lambda i: (0, 0)),   # w3
            pl.BlockSpec((1, 25),   lambda i: (0, 0)),   # b3
            pl.BlockSpec((1, 25),   lambda i: (0, 0)),   # w4 (torch [out=1, in=25] row)
            pl.BlockSpec((1, 1),    lambda i: (0, 0)),   # b4
        ],
        out_specs=pl.BlockSpec((1, TB), lambda i: (0, i)),  # lane-dense output slab
        compiler_params=pltpu.CompilerParams(
            dimension_semantics=("parallel",),
            vmem_limit_bytes=48 * 1024 * 1024),
    )(x, w1, b1, w2, b2, w3, b3, w4, b4)

    return out[0, :].reshape(B, 1)


def init_params(key, mu=0.0, sigma=1.0):
    """Matches Teacher.init_weights: weights AND biases ~ N(mu, sigma)."""
    ks = jax.random.split(key, 8)

    def nrm(k, shape, dtype=jnp.float32):
        return (mu + sigma * jax.random.normal(k, shape, jnp.float32)).astype(dtype)

    # NOTE: w1-w3 are stored [in, out] (transpose of torch's [out, in]); w4 keeps the
    # torch [out=1, in=25] row layout so the kernel's minor-minor contraction yields a
    # lane-dense [1, TB] output directly.  Weights bf16 (MXU inputs), biases f32.
    w1 = nrm(ks[0], (100, 75), jnp.bfloat16); b1 = nrm(ks[1], (1, 75))
    w2 = nrm(ks[2], (75, 50),  jnp.bfloat16); b2 = nrm(ks[3], (1, 50))
    w3 = nrm(ks[4], (50, 25),  jnp.bfloat16); b3 = nrm(ks[5], (1, 25))
    w4 = nrm(ks[6], (1, 25),   jnp.bfloat16); b4 = nrm(ks[7], (1, 1))
    return w1, b1, w2, b2, w3, b3, w4, b4


def _reference(x, params):
    # Pure f32 reference on the same (bf16-stored) weights.
    w1, b1, w2, b2, w3, b3, w4, b4 = [p.astype(jnp.float32) for p in params]
    h = jnp.maximum(x @ w1 + b1, 0.0)
    h = jnp.maximum(h @ w2 + b2, 0.0)
    h = jnp.maximum(h @ w3 + b3, 0.0)
    return h @ w4.T + b4


def _check(out, ref, tol=5e-2):
    # Scale-relative max error (robust to near-zero individual outputs with N(0,1)
    # weights; kernel uses bf16 MXU inputs with f32 accumulation).
    err = jnp.max(jnp.abs(out - ref)) / (jnp.max(jnp.abs(ref)) + 1e-6)
    assert float(err) < tol, float(err)


if __name__ == "__main__":
    key = jax.random.PRNGKey(0)
    kx, kp, kx2 = jax.random.split(key, 3)
    params = init_params(kp)

    # Small shape implied by the module: batch=2, features=100 (single-tile path).
    x = jax.random.normal(kx, (2, 100), jnp.float32)
    out = jax.block_until_ready(teacher_forward(x, params))
    ref = _reference(x, params)
    assert out.shape == (2, 1)
    _check(out, ref)

    # Multi-tile path with a ragged last block (600 = 256 + 256 + 88), no padding.
    x2 = jax.random.normal(kx2, (600, 100), jnp.float32)
    out2 = jax.block_until_ready(teacher_forward(x2, params, tb=256))
    ref2 = _reference(x2, params)
    assert out2.shape == (600, 1)
    _check(out2, ref2)

    print("KERNEL_OK")
</pallas_src>

<mosaic_0001>
module attributes {stable_mosaic.version = 11 : i64} {
  func.func @_teacher_kernel(%arg0: i32, %arg1: memref<2x100xf32, #tpu.memory_space<vmem>>, %arg2: memref<100x75xbf16, #tpu.memory_space<vmem>>, %arg3: memref<1x75xf32, #tpu.memory_space<vmem>>, %arg4: memref<75x50xbf16, #tpu.memory_space<vmem>>, %arg5: memref<1x50xf32, #tpu.memory_space<vmem>>, %arg6: memref<50x25xbf16, #tpu.memory_space<vmem>>, %arg7: memref<1x25xf32, #tpu.memory_space<vmem>>, %arg8: memref<1x25xbf16, #tpu.memory_space<vmem>>, %arg9: memref<1x1xf32, #tpu.memory_space<vmem>>, %arg10: memref<1x2xf32, #tpu.memory_space<vmem>>) attributes {dimension_semantics = [#tpu.dimension_semantics<parallel>], iteration_bounds = array<i64: 1>, scalar_prefetch = 0 : i64, scratch_operands = 0 : i64, tpu.core_type = #tpu.core_type<tc>, window_params = [{transform_indices = @transform_0, window_bounds = array<i64: 2, 100>}, {pipeline_mode = #tpu.pipeline_mode<synchronous>, transform_indices = @transform_1, window_bounds = array<i64: 100, 75>}, {pipeline_mode = #tpu.pipeline_mode<synchronous>, transform_indices = @transform_2, window_bounds = array<i64: 1, 75>}, {pipeline_mode = #tpu.pipeline_mode<synchronous>, transform_indices = @transform_3, window_bounds = array<i64: 75, 50>}, {pipeline_mode = #tpu.pipeline_mode<synchronous>, transform_indices = @transform_4, window_bounds = array<i64: 1, 50>}, {pipeline_mode = #tpu.pipeline_mode<synchronous>, transform_indices = @transform_5, window_bounds = array<i64: 50, 25>}, {pipeline_mode = #tpu.pipeline_mode<synchronous>, transform_indices = @transform_6, window_bounds = array<i64: 1, 25>}, {pipeline_mode = #tpu.pipeline_mode<synchronous>, transform_indices = @transform_7, window_bounds = array<i64: 1, 25>}, {pipeline_mode = #tpu.pipeline_mode<synchronous>, transform_indices = @transform_8, window_bounds = array<i64: 1, 1>}, {transform_indices = @transform_9, window_bounds = array<i64: 1, 2>}]} {
    %c0 = arith.constant 0 : index
    %c0_0 = arith.constant 0 : index
    %0 = vector.load %arg1[%c0, %c0_0] : memref<2x100xf32, #tpu.memory_space<vmem>>, vector<2x100xf32>
    %1 = arith.truncf %0 : vector<2x100xf32> to vector<2x100xbf16>
    %c0_1 = arith.constant 0 : index
    %c0_2 = arith.constant 0 : index
    %2 = vector.load %arg2[%c0_1, %c0_2] : memref<100x75xbf16, #tpu.memory_space<vmem>>, vector<100x75xbf16>
    %cst = arith.constant dense<0.000000e+00> : vector<2x75xf32>
    %3 = tpu.matmul %1, %2, %cst {dimension_numbers = #tpu.dot_dimension_numbers<[1], [0], [0], [1], [0, 0, 1, 1], [], []>} : vector<2x100xbf16>, vector<100x75xbf16>, vector<2x75xf32> -> vector<2x75xf32>
    %c0_3 = arith.constant 0 : index
    %c0_4 = arith.constant 0 : index
    %4 = vector.load %arg3[%c0_3, %c0_4] : memref<1x75xf32, #tpu.memory_space<vmem>>, vector<1x75xf32>
    %5 = vector.broadcast %4 : vector<1x75xf32> to vector<2x75xf32>
    %6 = arith.addf %3, %5 : vector<2x75xf32>
    %cst_5 = arith.constant 0.000000e+00 : f32
    %7 = vector.broadcast %cst_5 : f32 to vector<2x75xf32>
    %8 = arith.maximumf %6, %7 : vector<2x75xf32>
    %9 = arith.truncf %8 : vector<2x75xf32> to vector<2x75xbf16>
    %c0_6 = arith.constant 0 : index
    %c0_7 = arith.constant 0 : index
    %10 = vector.load %arg4[%c0_6, %c0_7] : memref<75x50xbf16, #tpu.memory_space<vmem>>, vector<75x50xbf16>
    %cst_8 = arith.constant dense<0.000000e+00> : vector<2x50xf32>
    %11 = tpu.matmul %9, %10, %cst_8 {dimension_numbers = #tpu.dot_dimension_numbers<[1], [0], [0], [1], [0, 0, 1, 1], [], []>} : vector<2x75xbf16>, vector<75x50xbf16>, vector<2x50xf32> -> vector<2x50xf32>
    %c0_9 = arith.constant 0 : index
    %c0_10 = arith.constant 0 : index
    %12 = vector.load %arg5[%c0_9, %c0_10] : memref<1x50xf32, #tpu.memory_space<vmem>>, vector<1x50xf32>
    %13 = vector.broadcast %12 : vector<1x50xf32> to vector<2x50xf32>
    %14 = arith.addf %11, %13 : vector<2x50xf32>
    %cst_11 = arith.constant 0.000000e+00 : f32
    %15 = vector.broadcast %cst_11 : f32 to vector<2x50xf32>
    %16 = arith.maximumf %14, %15 : vector<2x50xf32>
    %17 = arith.truncf %16 : vector<2x50xf32> to vector<2x50xbf16>
    %c0_12 = arith.constant 0 : index
    %c0_13 = arith.constant 0 : index
    %18 = vector.load %arg6[%c0_12, %c0_13] : memref<50x25xbf16, #tpu.memory_space<vmem>>, vector<50x25xbf16>
    %cst_14 = arith.constant dense<0.000000e+00> : vector<2x25xf32>
    %19 = tpu.matmul %17, %18, %cst_14 {dimension_numbers = #tpu.dot_dimension_numbers<[1], [0], [0], [1], [0, 0, 1, 1], [], []>} : vector<2x50xbf16>, vector<50x25xbf16>, vector<2x25xf32> -> vector<2x25xf32>
    %c0_15 = arith.constant 0 : index
    %c0_16 = arith.constant 0 : index
    %20 = vector.load %arg7[%c0_15, %c0_16] : memref<1x25xf32, #tpu.memory_space<vmem>>, vector<1x25xf32>
    %21 = vector.broadcast %20 : vector<1x25xf32> to vector<2x25xf32>
    %22 = arith.addf %19, %21 : vector<2x25xf32>
    %cst_17 = arith.constant 0.000000e+00 : f32
    %23 = vector.broadcast %cst_17 : f32 to vector<2x25xf32>
    %24 = arith.maximumf %22, %23 : vector<2x25xf32>
    %c0_18 = arith.constant 0 : index
    %c0_19 = arith.constant 0 : index
    %25 = vector.load %arg8[%c0_18, %c0_19] : memref<1x25xbf16, #tpu.memory_space<vmem>>, vector<1x25xbf16>
    %26 = arith.truncf %24 : vector<2x25xf32> to vector<2x25xbf16>
    %cst_20 = arith.constant dense<0.000000e+00> : vector<1x2xf32>
    %27 = tpu.matmul %25, %26, %cst_20 {dimension_numbers = #tpu.dot_dimension_numbers<[1], [1], [0], [0], [0, 0, 1, 0], [], []>} : vector<1x25xbf16>, vector<2x25xbf16>, vector<1x2xf32> -> vector<1x2xf32>
    %c0_21 = arith.constant 0 : index
    %c0_22 = arith.constant 0 : index
    %28 = vector.load %arg9[%c0_21, %c0_22] : memref<1x1xf32, #tpu.memory_space<vmem>>, vector<1x1xf32>
    %29 = vector.broadcast %28 : vector<1x1xf32> to vector<1x2xf32>
    %30 = arith.addf %27, %29 : vector<1x2xf32>
    %c0_23 = arith.constant 0 : index
    %c0_24 = arith.constant 0 : index
    %31 = vector.load %arg10[%c0_23, %c0_24] : memref<1x2xf32, #tpu.memory_space<vmem>>, vector<1x2xf32>
    tpu.vector_store %arg10[%c0_23, %c0_24], %30 {strides = array<i32>} : memref<1x2xf32, #tpu.memory_space<vmem>>, vector<1x2xf32>,
    return
  }
  func.func @transform_0(%arg0: i32) -> (i32, i32) {
    %c0_i32 = arith.constant 0 : i32
    %c0_i32_0 = arith.constant 0 : i32
    return %arg0, %c0_i32 : i32, i32
  }
  func.func @transform_1(%arg0: i32) -> (i32, i32) {
    %c0_i32 = arith.constant 0 : i32
    %c0_i32_0 = arith.constant 0 : i32
    %c0_i32_1 = arith.constant 0 : i32
    return %c0_i32, %c0_i32_0 : i32, i32
  }
  func.func @transform_2(%arg0: i32) -> (i32, i32) {
    %c0_i32 = arith.constant 0 : i32
    %c0_i32_0 = arith.constant 0 : i32
    %c0_i32_1 = arith.constant 0 : i32
    return %c0_i32, %c0_i32_0 : i32, i32
  }
  func.func @transform_3(%arg0: i32) -> (i32, i32) {
    %c0_i32 = arith.constant 0 : i32
    %c0_i32_0 = arith.constant 0 : i32
    %c0_i32_1 = arith.constant 0 : i32
    return %c0_i32, %c0_i32_0 : i32, i32
  }
  func.func @transform_4(%arg0: i32) -> (i32, i32) {
    %c0_i32 = arith.constant 0 : i32
    %c0_i32_0 = arith.constant 0 : i32
    %c0_i32_1 = arith.constant 0 : i32
    return %c0_i32, %c0_i32_0 : i32, i32
  }
  func.func @transform_5(%arg0: i32) -> (i32, i32) {
    %c0_i32 = arith.constant 0 : i32
    %c0_i32_0 = arith.constant 0 : i32
    %c0_i32_1 = arith.constant 0 : i32
    return %c0_i32, %c0_i32_0 : i32, i32
  }
  func.func @transform_6(%arg0: i32) -> (i32, i32) {
    %c0_i32 = arith.constant 0 : i32
    %c0_i32_0 = arith.constant 0 : i32
    %c0_i32_1 = arith.constant 0 : i32
    return %c0_i32, %c0_i32_0 : i32, i32
  }
  func.func @transform_7(%arg0: i32) -> (i32, i32) {
    %c0_i32 = arith.constant 0 : i32
    %c0_i32_0 = arith.constant 0 : i32
    %c0_i32_1 = arith.constant 0 : i32
    return %c0_i32, %c0_i32_0 : i32, i32
  }
  func.func @transform_8(%arg0: i32) -> (i32, i32) {
    %c0_i32 = arith.constant 0 : i32
    %c0_i32_0 = arith.constant 0 : i32
    %c0_i32_1 = arith.constant 0 : i32
    return %c0_i32, %c0_i32_0 : i32, i32
  }
  func.func @transform_9(%arg0: i32) -> (i32, i32) {
    %c0_i32 = arith.constant 0 : i32
    %c0_i32_0 = arith.constant 0 : i32
    return %c0_i32, %arg0 : i32, i32
  }
}

</mosaic_0001>

<bundles_post_ra>
// kernel: tpu_custom_call.1
= control target key start
LH: loop header
LB: loop body
LE: loop exit
PB: predicated region body
PF: predicated region fallthrough
CT: control target
= control target key end

     0   :  { %s703_s0 = inlined_call_operand.vmem [shape: f32[2,100], index: 0, kind: input, shape index: {}]   ;;  %s704_s1 = inlined_call_operand.vmem [shape: bf16[100,75], index: 1, kind: input, shape index: {}]   ;;  %s705_s2 = inlined_call_operand.vmem [shape: f32[1,75], index: 2, kind: input, shape index: {}]   ;;  %s706_s3 = inlined_call_operand.vmem [shape: bf16[75,50], index: 3, kind: input, shape index: {}]   ;;  %s707_s4 = inlined_call_operand.vmem [shape: f32[1,50], index: 4, kind: input, shape index: {}]   ;;  %s708_s5 = inlined_call_operand.vmem [shape: bf16[50,25], index: 5, kind: input, shape index: {}]   ;;  %s709_s6 = inlined_call_operand.vmem [shape: f32[1,25], index: 6, kind: input, shape index: {}]   ;;  %s710_s7 = inlined_call_operand.vmem [shape: bf16[1,25], index: 7, kind: input, shape index: {}]   ;;  %s711_s8 = inlined_call_operand.<no memory space> [shape: f32[1,1], index: 8, kind: input, shape index: {}]   ;;  %s712_s9 = inlined_call_operand.hbm [shape: f32[1,2], index: 9, kind: output, shape index: {}]  }
   0x1   :  { %v14_v0 = vstv %s711_s8 }
   0x2   :  { %15 = vst [vmem:[#allocation2] sm:$0x1] %v14_v0 }
   0x3   :  { %v505_v1 = vld [vmem:[%s704_s1] sm:$0xff]   ;;  %v545_v2 = vmov 0.0   ;;  %v506_v3 = vld [vmem:[%s704_s1 + $0x8] sm:$0xff]   ;;  %vm546_vm0 = vmmov 0   ;;  %v507_v4 = vld [vmem:[%s704_s1 + $0x10] sm:$0xff]  }
   0x4   :  { %449 = vmatprep.subr.bf16.mxu0 %v545_v2  ;;  %467 = vmatprep.subr.bf16.mxu1 %v545_v2  ;;  %v512_v5 = vld [vmem:[%s706_s3] sm:$0xff]   ;;  %v513_v6 = vld [vmem:[%s706_s3 + $0x8] sm:$0xff]   ;;  %v508_v7 = vld [vmem:[%s704_s1 + $0x18] sm:$0xff]  }
   0x5   :  { %450 = vmatpush3.bf16.msra.mxu0 %v505_v1  ;;  %463 = vmatprep.mubr.msk.bf16.mxu0 %vm546_vm0, %v545_v2  ;;  %v514_v8 = vld [vmem:[%s706_s3 + $0x10] sm:$0xff]   ;;  %v509_v9 = vld [vmem:[%s704_s1 + $0x20] sm:$0xff]  }
   0x6   :  { %451 = vmatprep.subr.bf16.mxu0 %v545_v2  ;;  %477 = vmatprep.mubr.msk.bf16.mxu1 %vm546_vm0, %v545_v2 }
   0x7   :  { %468 = vmatpush3.bf16.msra.mxu1 %v512_v5 }
   0x8   :  { %469 = vmatprep.subr.bf16.mxu1 %v545_v2 }
   0x9   :  { %452 = vmatpush3.bf16.msra.mxu0 %v506_v3 }
   0xa   :  { %453 = vmatprep.subr.bf16.mxu0 %v545_v2 }
   0xb   :  { %470 = vmatpush3.bf16.msra.mxu1 %v513_v6 }
   0xc   :  { %471 = vmatprep.subr.bf16.mxu1 %v545_v2 }
   0xd   :  { %454 = vmatpush3.bf16.msra.mxu0 %v507_v4 }
   0xe   :  { %455 = vmatprep.subr.bf16.mxu0 %v545_v2 }
  0x11   :  { %456 = vmatpush3.bf16.msra.mxu0 %v508_v7 }
  0x12   :  { %16 = vsyncpa [#allocation4], 0  ;;  %457 = vmatprep.subr.bf16.mxu0 %v545_v2  ;;  %472 = vmatpush3.bf16.msra.mxu1 %v514_v8  ;;  %v510_v10 = vld [vmem:[%s704_s1 + $0x28] sm:$0xff]   ;;  %v511_v11 = vld [vmem:[%s704_s1 + $0x30] ss:$0 sps:$4 sm:$0x33]   ;;  %v338_v54 = vlaneseq }
  0x13   :  { %473 = vmatprep.subr.bf16.mxu1 %v545_v2  ;;  %vm101_vm1 = vcmask 1041408   ;;  %v36_v12 = vld [vmem:[%s703_s0] sm:$0x3]  ;;  %vm97_vm2 = vcmask 818176   ;;  %v515_v15 = vld [vmem:[%s706_s3 + $0x18] sm:$0xff]   ;;  %vm197_vm3 = vcmask 1044480  }
  0x14   :  { %v103_v13 = vsel %vm101_vm1, %v511_v11, 0  ;;  %v37_v14 = vpack.c.bf16 %v36_v12, %v36_v12  ;;  %v516_v16 = vld [vmem:[%s706_s3 + $0x20] sm:$0x3f]   ;;  %vm198_vm4 = vcmask 1045504   ;;  %v547_v17 = vmov 65535   ;;  %v518_v30 = vld [vmem:[%s708_s5 + $0x8] sm:$0xff]  }
  0x15   :  { %458 = vmatpush3.bf16.msra.mxu0 %v509_v9  ;;  %v199_v18 = vsel %vm197_vm3, 4294967295, %v547_v17  ;;  %v405_v21 = vld [vmem:[%s705_s2] ss:$0 sm:$0xff]  ;;  %vm193_vm5 = vcmask 613376   ;;  %v519_v31 = vld [vmem:[%s708_s5 + $0x10] sm:$0xff]   ;;  %vm285_vm6 = vcmask 1040384  }
  0x16   :  { %459 = vmatprep.subr.bf16.mxu0 %v545_v2  ;;  %474 = vmatpush3.bf16.msra.mxu1 %v515_v15  ;;  %v200_v19 = vsel %vm198_vm4, %v199_v18, 0  ;;  %v517_v28 = vld [vmem:[%s708_s5] sm:$0xff]   ;;  %v520_v32 = vld [vmem:[%s708_s5 + $0x18] ss:$0 sps:$4 sm:$0x11]   ;;  %vm281_vm7 = vcmask 408576  }
  0x17   :  { %475 = vmatprep.subr.bf16.mxu1 %v545_v2  ;;  %v202_v20 = vand.u32 %v516_v16, %v200_v19  ;;  %v287_v33 = vsel %vm285_vm6, %v520_v32, 0  ;;  %v414_v34 = vld [vmem:[%s707_s4] ss:$0 sm:$0xff]  ;;  %v548_v43 = vmov 0   ;;  %vm342_vm8 = vcmask 203776  }
  0x18   :  { %v332_v42 = vld [vmem:[#allocation2] sm:$0x1]  ;;  %504 = vset.pattern.permute.xlu0 %v548_v43  ;;  %v339_v55 = vshrl.u32 %v338_v54, 7  ;;  %vm389_vm9 = vcmask 8192  }
  0x19   :  { %460 = vmatpush3.bf16.msra.mxu0 %v510_v10  ;;  %335 = vperm.xlu0 %504, %v332_v42   ;;  %v421_v44 = vld [vmem:[%s709_s6] ss:$0 sm:$0xff]  ;;  %s549_s6 = smov [#allocation3]  }
  0x1a   :  { %461 = vmatprep.subr.bf16.mxu0 %v545_v2  ;;  %476 = vmatpush3.bf16.msra.mxu1 %v202_v20  ;;  %v330_v53 = vld [vmem:[%s710_s7] sm:$0x1]  ;;  %v340_v56 = vsub.s32 0, %v339_v55  ;;  %s397_s24 = sshll.u32 %s549_s6, 4  ;;  %s398_s24 = int_to_ptr.vmem [resolvable:$true] %s397_s24 }
  0x1b   :  { %481 = vmatprep.subr.bf16.mxu1 %v545_v2  ;;  %s521_s25 = scalar_lea.vmem %s398_s24, 16  ;;  %s525_s26 = scalar_lea.vmem %s398_s24, 32 }
  0x1c   :  { %p522_p0 = scmp.ne.s32.totalorder %s398_s24, %s521_s25  ;;  %p526_p1 = scmp.lt.s32.totalorder %s398_s24, %s398_s24 }
  0x1d   :  { %462 = vmatpush3.bf16.msra.mxu0 %v103_v13  ;;  %p527_p2 = scmp.lt.s32.totalorder %s525_s26, %s521_s25 }
  0x1e   :  { %493 = vmatprep.subr.bf16.mxu0 %v545_v2 }
  0x1f   :  { %p528_p3 = por %p527_p2, %p526_p1 }
  0x20   :  { %464 = vmatmul.mubr.msk.bf16.vlgmr.msra.gmra.mrb[0].mxu0 %vm97_vm2, %v37_v14 }
  0x21   :  { %495 = vmatprep.mubr.msk.bf16.mxu0 %vm546_vm0, %v545_v2  ;;  %p529_p4 = pnand %p528_p3, %p522_p0 }
  0x98   :  { %v336_v57 = vpop.permute.xlu0 %335 }
  0x99   :  { %v341_v58 = vrot.slane %v336_v57, %v340_v56 }
  0xf3   :  { %v139_v22 = vpop.f32.mrb[0].mxu0 }
  0xf4   :  { %v140_v23 = vadd.f32 %v405_v21, %v139_v22  ;;  %v465_v24 = vpop.f32.mrb[1].mxu0 }
  0xf5   :  { %v142_v25 = vpop.f32.mrb[2].mxu0 }
  0xf6   :  { %v145_v26 = vmax.f32 %v140_v23, 0.0  ;;  %v466_v27 = vpop.f32.mrb[3].mxu0 }
  0xf8   :  { %v146_v29 = vpack.c.bf16 %v145_v26, %v145_v26 }
  0xfa   :  { %478 = vmatmul.mubr.msk.bf16.vlgmr.msra.gmra.mrb[0].mxu1 %vm193_vm5, %v146_v29 }
  0xfb   :  { %482 = vmatpush3.bf16.msra.mxu1 %v517_v28  ;;  %489 = vmatprep.mubr.msk.bf16.mxu1 %vm546_vm0, %v545_v2 }
  0xfc   :  { %483 = vmatprep.subr.bf16.mxu1 %v545_v2 }
  0xff   :  { %484 = vmatpush3.bf16.msra.mxu1 %v518_v30 }
 0x100   :  { %485 = vmatprep.subr.bf16.mxu1 %v545_v2 }
 0x103   :  { %486 = vmatpush3.bf16.msra.mxu1 %v519_v31 }
 0x104   :  { %487 = vmatprep.subr.bf16.mxu1 %v545_v2 }
 0x107   :  { %488 = vmatpush3.bf16.msra.mxu1 %v287_v33 }
 0x1cd   :  { %v238_v35 = vpop.f32.mrb[0].mxu1 }
 0x1ce   :  { %v239_v36 = vadd.f32 %v414_v34, %v238_v35  ;;  %v479_v37 = vpop.f32.mrb[1].mxu1 }
 0x1cf   :  { %v241_v38 = vpop.f32.mrb[2].mxu1 }
 0x1d0   :  { %v244_v39 = vmax.f32 %v239_v36, 0.0  ;;  %v480_v40 = vpop.f32.mrb[3].mxu1 }
 0x1d2   :  { %v245_v41 = vpack.c.bf16 %v244_v39, %v244_v39 }
 0x1d4   :  { %490 = vmatmul.mubr.msk.bf16.vlgmr.msra.gmra.mrb[4].mxu1 %vm281_vm7, %v245_v41 }
 0x2a7   :  { %v323_v45 = vpop.f32.mrb[4].mxu1 }
 0x2a8   :  { %v324_v46 = vadd.f32 %v421_v44, %v323_v45  ;;  %v491_v47 = vpop.f32.mrb[5].mxu1 }
 0x2a9   :  { %v326_v48 = vpop.f32.mrb[6].mxu1 }
 0x2aa   :  { %v329_v49 = vmax.f32 %v324_v46, 0.0  ;;  %v492_v50 = vpop.f32.mrb[7].mxu1 }
 0x2ac   :  { %v331_v51 = vpack.c.bf16 %v329_v49, %v329_v49 }
 0x2ae   :  { %v347_v52 = vsel %vm342_vm8, %v331_v51, 0 }
 0x2af   :  { %494 = vmatpush3.bf16.xpose.msra.mxu0 %v347_v52 }
 0x2b6   :  { %496 = vmatmul.mubr.msk.bf16.vlgmr.msra.gmra.mrb[4].mxu0 %vm342_vm8, %v330_v53 }
 0x389   :  { %v383_v59 = vpop.f32.mrb[4].mxu0 }
 0x38a   :  { %v384_v60 = vadd.f32 %v383_v59, %v341_v58  ;;  %v497_v61 = vpop.f32.mrb[5].mxu0 }
 0x38b   :  { %v386_v62 = vpop.f32.mrb[6].mxu0 }
 0x38c   :  { %v498_v63 = vpop.f32.mrb[7].mxu0  ;;  %390 = vst.msk [vmem:[#allocation3] sm:$0x1] %vm389_vm9, %v384_v60 }
 0x38d   :  { %532 = shalt.err (!%p529_p4)
}
 0x38e   :  { %s533_s28 = scalar_lea.hbm %s712_s9, 16 }
 0x38f   :  { %p534_p5 = scmp.ne.s32.totalorder %s712_s9, %s533_s28  ;;  %p537_p6 = scmp.lt.u32.totalorder %s533_s28, %s712_s9 }
 0x391   :  { %p539_p7 = pnand %p537_p6, %p534_p5 }
 0x393   :  { %542 = shalt.err (!%p539_p7)
}
 0x394   :  { %400 = dma.vmem_to_hbm [thread:$0]  %s398_s24, 16, %s712_s9, [#allocation4]  }
 0x395   :  { %543 = dma.done.wait [#allocation4], 16  }
 0x396   :  { %544 = vsyncadd [#allocation4], 4294967280 }
 0x397   :  { %404 = vsyncpa [#allocation4], 1 }

</bundles_post_ra>
